<compile_context>
chip_gen: v7x
topology: tpu7x:2x2x1
jax: 0.10.0
libtpu: 0.0.40
codegen_flags: <defaults>
</compile_context>

<pallas_src>
import functools

import numpy as np
import jax
import jax.numpy as jnp
from jax.experimental import pallas as pl
from jax.experimental.pallas import tpu as pltpu

_SUB = 8          # sample-chunks packed onto sublanes
_NUM_CORES = 2    # leading "parallel" grid axis (dual-TensorCore split on v7x)


def _cdiv(a, b):
    return (a + b - 1) // b


def _alpha_vector(alpha, num_classes):
    """[alpha, 1-alpha, ...] for scalar alpha, or an explicit per-class list."""
    if isinstance(alpha, (list, tuple, np.ndarray, jnp.ndarray)):
        a = np.asarray(alpha, dtype=np.float32)
        assert a.shape == (num_classes,)
    else:
        assert float(alpha) < 1
        a = np.full((num_classes,), 1.0 - float(alpha), dtype=np.float32)
        a[0] = np.float32(alpha)
    return tuple(float(v) for v in a)


def _focal_loss_kernel(preds_ref, labels_ref, out_ref, acc_ref, *,
                       alpha, gamma, num_classes, lanes_total, true_m,
                       blocks_per_core):
    core = pl.program_id(0)
    step = pl.program_id(1)

    @pl.when(step == 0)
    def _():
        acc_ref[...] = jnp.zeros_like(acc_ref)

    C = num_classes
    S, Tg = labels_ref.shape              # (8, Tg): sublane chunks x lane samples
    labels = labels_ref[...]

    # Per-class (S, Tg) views: each class occupies its own 8-sublane group, so
    # these static slices are tile-aligned (no relayout).
    xc = [preds_ref[c * S:(c + 1) * S, :].astype(jnp.float32) for c in range(C)]

    # Numerically stable softmax pieces without materialising log_softmax[C,..].
    m = xc[0]
    for c in range(1, C):
        m = jnp.maximum(m, xc[c])

    zeros = jnp.zeros((S, Tg), jnp.float32)
    sumexp, sel_exp, sel_shift, alpha_t = zeros, zeros, zeros, zeros
    for c in range(C):
        sh = xc[c] - m
        e = jnp.exp(sh)
        sumexp = sumexp + e
        hit = labels == c
        sel_exp = jnp.where(hit, e, sel_exp)
        sel_shift = jnp.where(hit, sh, sel_shift)
        alpha_t = jnp.where(hit, jnp.float32(alpha[c]), alpha_t)

    logp_t = sel_shift - jnp.log(sumexp)       # log_softmax gathered at the label
    p_t = sel_exp / sumexp                     # softmax gathered at the label

    one_minus = 1.0 - p_t
    g = float(gamma)
    if g.is_integer() and g >= 0.0:
        gi = int(g)
        if gi == 0:
            mod = jnp.ones_like(one_minus)
        else:
            mod = one_minus                    # gamma-1 extra multiplies
            for _ in range(gi - 1):
                mod = mod * one_minus
    else:
        mod = jnp.power(one_minus, jnp.float32(g))

    loss = -(alpha_t * mod) * logp_t           # (S, Tg)

    # Mask the ragged tail of the last block and any fully-duplicated block on
    # the second core (the index_map clamps; the UNclamped index is used here).
    blk = core * blocks_per_core + step
    lane = jax.lax.broadcasted_iota(jnp.int32, (S, Tg), 1)
    subl = jax.lax.broadcasted_iota(jnp.int32, (S, Tg), 0)
    col = blk * Tg + lane                      # column in the repacked [*, Mg] array
    sample = subl * lanes_total + col          # original flat sample index
    valid = (col < lanes_total) & (sample < true_m)
    acc_ref[...] += jnp.where(valid, loss, 0.0)

    @pl.when(step == pl.num_programs(1) - 1)
    def _():
        out_ref[...] = jnp.full(out_ref.shape, jnp.sum(acc_ref[...]), jnp.float32)


def focal_loss_pallas(preds, labels, *, alpha=0.7, gamma=2, num_classes=3,
                      size_average=True, tile_samples=262144):
    """Focal loss forward.  preds: [..., C] float, labels: [...] int."""
    C = preds.shape[-1]
    assert C == num_classes
    alpha_vec = _alpha_vector(alpha, num_classes)

    preds2d = jnp.reshape(preds, (-1, C))                  # [M, C], native dtype
    labels1d = jnp.reshape(labels, (-1,)).astype(jnp.int32)
    M = preds2d.shape[0]

    Mg = _cdiv(M, _SUB)        # samples per sublane chunk (lane columns)
    M8 = Mg * _SUB
    if M8 != M:                # tiny pad (<8 samples) so the 8-way repack works
        preds2d = jnp.pad(preds2d, ((0, M8 - M), (0, 0)))
        labels1d = jnp.pad(labels1d, (0, M8 - M))

    # Repack: [M8, C] -> [C, M8] -> [C*8, Mg]; labels [M8] -> [8, Mg].
    # TODO(synk): one HBM round-trip; upstream should emit logits as [C, M].
    preds_rp = preds2d.T.reshape(C * _SUB, Mg)
    labels_rp = labels1d.reshape(_SUB, Mg)

    # Lane tile: a multiple of 128 (ragged tail masked in-kernel), or the full
    # lane extent when everything already fits in one block.
    max_lanes = max(128, (int(tile_samples) // _SUB) // 128 * 128)
    Tg = Mg if Mg <= max_lanes else max_lanes
    NB = _cdiv(Mg, Tg)                    # total lane blocks
    NT = _cdiv(NB, _NUM_CORES)            # blocks per core
    last_blk = NB - 1

    def _blk_idx(c, i):
        # Clamp so a duplicated trailing block never DMAs out of bounds; its
        # contribution is masked out in the kernel via the unclamped index.
        return jnp.minimum(c * NT + i, last_blk)

    kernel = functools.partial(
        _focal_loss_kernel,
        alpha=alpha_vec, gamma=gamma, num_classes=C,
        lanes_total=Mg, true_m=int(M), blocks_per_core=NT)

    grid_spec = pltpu.PrefetchScalarGridSpec(
        num_scalar_prefetch=0,
        grid=(_NUM_CORES, NT),
        in_specs=[
            pl.BlockSpec((C * _SUB, Tg), lambda c, i: (0, _blk_idx(c, i))),
            pl.BlockSpec((_SUB, Tg), lambda c, i: (0, _blk_idx(c, i))),
        ],
        out_specs=pl.BlockSpec((1, _SUB, 128), lambda c, i: (c, 0, 0)),
        scratch_shapes=[pltpu.VMEM((_SUB, Tg), jnp.float32)],
    )

    partials = pl.pallas_call(
        kernel,
        out_shape=jax.ShapeDtypeStruct((_NUM_CORES, _SUB, 128), jnp.float32),
        grid_spec=grid_spec,
        compiler_params=pltpu.CompilerParams(
            dimension_semantics=("parallel", "arbitrary"),
            vmem_limit_bytes=48 * 1024 * 1024),
    )(preds_rp, labels_rp)

    total = jnp.sum(partials[:, 0, 0])
    if size_average:
        total = total / jnp.float32(M)
    return total


def focal_loss_ref(preds, labels, *, alpha=0.7, gamma=2, num_classes=3,
                   size_average=True):
    """Pure-JAX reference mirroring the PyTorch module."""
    alpha_vec = jnp.asarray(_alpha_vector(alpha, num_classes), dtype=jnp.float32)
    C = preds.shape[-1]
    p = jnp.reshape(preds, (-1, C)).astype(jnp.float32)
    l = jnp.reshape(labels, (-1,)).astype(jnp.int32)
    log_soft = jax.nn.log_softmax(p, axis=1)
    logp_t = jnp.take_along_axis(log_soft, l[:, None], axis=1)[:, 0]
    p_t = jnp.exp(logp_t)
    a_t = alpha_vec[l]
    loss = -a_t * jnp.power(1.0 - p_t, float(gamma)) * logp_t
    return jnp.mean(loss) if size_average else jnp.sum(loss)


if __name__ == "__main__":
    # Module defaults: alpha=0.7 (scalar), gamma=2, num_classes=3, size_average=True
    num_classes = 3
    B, N = 2, 4
    key = jax.random.PRNGKey(0)
    k1, k2, k3, k4 = jax.random.split(key, 4)
    preds = jax.random.normal(k1, (B, N, num_classes), dtype=jnp.float32)
    labels = jax.random.randint(k2, (B, N), 0, num_classes, dtype=jnp.int32)

    # mean (size_average=True)
    out = focal_loss_pallas(preds, labels, alpha=0.7, gamma=2,
                            num_classes=num_classes, size_average=True)
    out = jax.block_until_ready(out)
    ref = focal_loss_ref(preds, labels, alpha=0.7, gamma=2,
                         num_classes=num_classes, size_average=True)
    assert jnp.allclose(out, ref, rtol=1e-5, atol=1e-6), (out, ref)

    # sum (size_average=False) — exercises the other epilogue path
    out_s = focal_loss_pallas(preds, labels, alpha=0.7, gamma=2,
                              num_classes=num_classes, size_average=False)
    out_s = jax.block_until_ready(out_s)
    ref_s = focal_loss_ref(preds, labels, alpha=0.7, gamma=2,
                           num_classes=num_classes, size_average=False)
    assert jnp.allclose(out_s, ref_s, rtol=1e-5, atol=1e-6), (out_s, ref_s)

    # Larger case: exercises the 8-way repack pad (M % 8 != 0), a multi-block
    # grid, the two-core work split, and the ragged-tail in-kernel mask.
    Mbig = 4999
    preds_big = jax.random.normal(k3, (Mbig, num_classes), dtype=jnp.float32)
    labels_big = jax.random.randint(k4, (Mbig,), 0, num_classes, dtype=jnp.int32)
    out_b = focal_loss_pallas(preds_big, labels_big, alpha=0.7, gamma=2,
                              num_classes=num_classes, size_average=True,
                              tile_samples=4096)
    out_b = jax.block_until_ready(out_b)
    ref_b = focal_loss_ref(preds_big, labels_big, alpha=0.7, gamma=2,
                           num_classes=num_classes, size_average=True)
    assert jnp.allclose(out_b, ref_b, rtol=2e-4, atol=1e-6), (out_b, ref_b)

    print("KERNEL_OK")
</pallas_src>

<mosaic_0001>
module attributes {stable_mosaic.version = 11 : i64} {
  func.func @_focal_loss_kernel(%arg0: i32, %arg1: i32, %arg2: memref<24x1xf32, #tpu.memory_space<vmem>>, %arg3: memref<8x1xi32, #tpu.memory_space<vmem>>, %arg4: memref<1x8x128xf32, #tpu.memory_space<vmem>>, %arg5: memref<8x1xf32, #tpu.memory_space<vmem>>) attributes {dimension_semantics = [#tpu.dimension_semantics<parallel>, #tpu.dimension_semantics<arbitrary>], iteration_bounds = array<i64: 2, 1>, scalar_prefetch = 0 : i64, scratch_operands = 1 : i64, tpu.core_type = #tpu.core_type<tc>, window_params = [{transform_indices = @transform_0, window_bounds = array<i64: 24, 1>}, {transform_indices = @transform_1, window_bounds = array<i64: 8, 1>}, {transform_indices = @transform_2, window_bounds = array<i64: 1, 8, 128>}]} {
    %c0_i32 = arith.constant 0 : i32
    %0 = arith.cmpi eq, %arg1, %c0_i32 : i32
    %1 = arith.extui %0 : i1 to i32
    %c0_i32_0 = arith.constant 0 : i32
    %2 = arith.cmpi ne, %1, %c0_i32_0 : i32
    scf.if %2 {
      %cst_23 = arith.constant 0.000000e+00 : f32
      %70 = vector.broadcast %cst_23 : f32 to vector<8x1xf32>
      %c0_24 = arith.constant 0 : index
      %c0_25 = arith.constant 0 : index
      %71 = vector.load %arg5[%c0_24, %c0_25] : memref<8x1xf32, #tpu.memory_space<vmem>>, vector<8x1xf32>
      tpu.vector_store %arg5[%c0_24, %c0_25], %70 {strides = array<i32>} : memref<8x1xf32, #tpu.memory_space<vmem>>, vector<8x1xf32>,
    } else {
    }
    %c0 = arith.constant 0 : index
    %c0_1 = arith.constant 0 : index
    %3 = vector.load %arg3[%c0, %c0_1] : memref<8x1xi32, #tpu.memory_space<vmem>>, vector<8x1xi32>
    %c0_2 = arith.constant 0 : index
    %c0_3 = arith.constant 0 : index
    %4 = vector.load %arg2[%c0_2, %c0_3] : memref<24x1xf32, #tpu.memory_space<vmem>>, vector<8x1xf32>
    %c8 = arith.constant 8 : index
    %c0_4 = arith.constant 0 : index
    %5 = vector.load %arg2[%c8, %c0_4] : memref<24x1xf32, #tpu.memory_space<vmem>>, vector<8x1xf32>
    %c16 = arith.constant 16 : index
    %c0_5 = arith.constant 0 : index
    %6 = vector.load %arg2[%c16, %c0_5] : memref<24x1xf32, #tpu.memory_space<vmem>>, vector<8x1xf32>
    %7 = arith.maximumf %4, %5 : vector<8x1xf32>
    %8 = arith.maximumf %7, %6 : vector<8x1xf32>
    %cst = arith.constant 0.000000e+00 : f32
    %9 = vector.broadcast %cst : f32 to vector<8x1xf32>
    %10 = arith.subf %4, %8 : vector<8x1xf32>
    %11 = math.exp %10 : vector<8x1xf32>
    %12 = arith.addf %9, %11 : vector<8x1xf32>
    %c0_i32_6 = arith.constant 0 : i32
    %13 = vector.broadcast %c0_i32_6 : i32 to vector<8x1xi32>
    %14 = arith.cmpi eq, %3, %13 : vector<8x1xi32>
    %15 = arith.select %14, %11, %9 : vector<8x1xi1>, vector<8x1xf32>
    %16 = arith.select %14, %10, %9 : vector<8x1xi1>, vector<8x1xf32>
    %cst_7 = arith.constant 0.699999988 : f32
    %17 = vector.broadcast %cst_7 : f32 to vector<8x1xf32>
    %18 = arith.select %14, %17, %9 : vector<8x1xi1>, vector<8x1xf32>
    %19 = arith.subf %5, %8 : vector<8x1xf32>
    %20 = math.exp %19 : vector<8x1xf32>
    %21 = arith.addf %12, %20 : vector<8x1xf32>
    %c1_i32 = arith.constant 1 : i32
    %22 = vector.broadcast %c1_i32 : i32 to vector<8x1xi32>
    %23 = arith.cmpi eq, %3, %22 : vector<8x1xi32>
    %24 = arith.select %23, %20, %15 : vector<8x1xi1>, vector<8x1xf32>
    %25 = arith.select %23, %19, %16 : vector<8x1xi1>, vector<8x1xf32>
    %cst_8 = arith.constant 3.000000e-01 : f32
    %26 = vector.broadcast %cst_8 : f32 to vector<8x1xf32>
    %27 = arith.select %23, %26, %18 : vector<8x1xi1>, vector<8x1xf32>
    %28 = arith.subf %6, %8 : vector<8x1xf32>
    %29 = math.exp %28 : vector<8x1xf32>
    %30 = arith.addf %21, %29 : vector<8x1xf32>
    %c2_i32 = arith.constant 2 : i32
    %31 = vector.broadcast %c2_i32 : i32 to vector<8x1xi32>
    %32 = arith.cmpi eq, %3, %31 : vector<8x1xi32>
    %33 = arith.select %32, %29, %24 : vector<8x1xi1>, vector<8x1xf32>
    %34 = arith.select %32, %28, %25 : vector<8x1xi1>, vector<8x1xf32>
    %cst_9 = arith.constant 3.000000e-01 : f32
    %35 = vector.broadcast %cst_9 : f32 to vector<8x1xf32>
    %36 = arith.select %32, %35, %27 : vector<8x1xi1>, vector<8x1xf32>
    %37 = math.log %30 : vector<8x1xf32>
    %38 = arith.subf %34, %37 : vector<8x1xf32>
    %39 = arith.divf %33, %30 : vector<8x1xf32>
    %cst_10 = arith.constant 1.000000e+00 : f32
    %40 = vector.broadcast %cst_10 : f32 to vector<8x1xf32>
    %41 = arith.subf %40, %39 : vector<8x1xf32>
    %42 = arith.mulf %41, %41 : vector<8x1xf32>
    %43 = arith.mulf %36, %42 : vector<8x1xf32>
    %cst_11 = arith.constant 0.000000e+00 : f32
    %44 = vector.broadcast %cst_11 : f32 to vector<8x1xf32>
    %45 = arith.subf %44, %43 : vector<8x1xf32>
    %46 = arith.mulf %45, %38 : vector<8x1xf32>
    %c1_i32_12 = arith.constant 1 : i32
    %47 = arith.muli %arg0, %c1_i32_12 : i32
    %48 = arith.addi %47, %arg1 : i32
    %49 = tpu.iota {dimensions = array<i32: 1>} : vector<8x1xi32>
    %50 = tpu.iota {dimensions = array<i32: 0>} : vector<8x1xi32>
    %c1_i32_13 = arith.constant 1 : i32
    %51 = arith.muli %48, %c1_i32_13 : i32
    %52 = vector.broadcast %51 : i32 to vector<8x1xi32>
    %53 = arith.addi %52, %49 : vector<8x1xi32>
    %c1_i32_14 = arith.constant 1 : i32
    %54 = vector.broadcast %c1_i32_14 : i32 to vector<8x1xi32>
    %55 = arith.muli %50, %54 : vector<8x1xi32>
    %56 = arith.addi %55, %53 : vector<8x1xi32>
    %c1_i32_15 = arith.constant 1 : i32
    %57 = vector.broadcast %c1_i32_15 : i32 to vector<8x1xi32>
    %58 = arith.cmpi slt, %53, %57 : vector<8x1xi32>
    %c8_i32 = arith.constant 8 : i32
    %59 = vector.broadcast %c8_i32 : i32 to vector<8x1xi32>
    %60 = arith.cmpi slt, %56, %59 : vector<8x1xi32>
    %61 = arith.andi %58, %60 : vector<8x1xi1>
    %c0_16 = arith.constant 0 : index
    %c0_17 = arith.constant 0 : index
    %62 = vector.load %arg5[%c0_16, %c0_17] : memref<8x1xf32, #tpu.memory_space<vmem>>, vector<8x1xf32>
    %cst_18 = arith.constant 0.000000e+00 : f32
    %63 = vector.broadcast %cst_18 : f32 to vector<8x1xf32>
    %64 = arith.select %61, %46, %63 : vector<8x1xi1>, vector<8x1xf32>
    %65 = arith.addf %62, %64 : vector<8x1xf32>
    %c0_19 = arith.constant 0 : index
    %c0_20 = arith.constant 0 : index
    %66 = vector.load %arg5[%c0_19, %c0_20] : memref<8x1xf32, #tpu.memory_space<vmem>>, vector<8x1xf32>
    tpu.vector_store %arg5[%c0_19, %c0_20], %65 {strides = array<i32>} : memref<8x1xf32, #tpu.memory_space<vmem>>, vector<8x1xf32>,
    %c0_i32_21 = arith.constant 0 : i32
    %67 = arith.cmpi eq, %arg1, %c0_i32_21 : i32
    %68 = arith.extui %67 : i1 to i32
    %c0_i32_22 = arith.constant 0 : i32
    %69 = arith.cmpi ne, %68, %c0_i32_22 : i32
    scf.if %69 {
      %c0_23 = arith.constant 0 : index
      %c0_24 = arith.constant 0 : index
      %70 = vector.load %arg5[%c0_23, %c0_24] : memref<8x1xf32, #tpu.memory_space<vmem>>, vector<8x1xf32>
      %71 = vector.shape_cast %70 : vector<8x1xf32> to vector<1x8x1xf32>
      %cst_25 = arith.constant dense<0.000000e+00> : vector<1xf32>
      %72 = vector.multi_reduction <add>, %71, %cst_25 [1, 2] : vector<1x8x1xf32> to vector<1xf32>
      %73 = vector.shape_cast %72 : vector<1xf32> to vector<1x1x1xf32>
      %74 = vector.extract %73[0, 0, 0] : f32 from vector<1x1x1xf32>
      %75 = vector.broadcast %74 : f32 to vector<1x8x128xf32>
      %c0_26 = arith.constant 0 : index
      %c0_27 = arith.constant 0 : index
      %c0_28 = arith.constant 0 : index
      %76 = vector.load %arg4[%c0_26, %c0_27, %c0_28] : memref<1x8x128xf32, #tpu.memory_space<vmem>>, vector<1x8x128xf32>
      tpu.vector_store %arg4[%c0_26, %c0_27, %c0_28], %75 {strides = array<i32>} : memref<1x8x128xf32, #tpu.memory_space<vmem>>, vector<1x8x128xf32>,
    } else {
    }
    return
  }
  func.func @transform_0(%arg0: i32, %arg1: i32) -> (i32, i32) {
    %c1_i32 = arith.constant 1 : i32
    %0 = arith.muli %arg0, %c1_i32 : i32
    %1 = arith.addi %0, %arg1 : i32
    %c0_i32 = arith.constant 0 : i32
    %2 = arith.minsi %1, %c0_i32 : i32
    %c0_i32_0 = arith.constant 0 : i32
    %c0_i32_1 = arith.constant 0 : i32
    return %c0_i32_0, %2 : i32, i32
  }
  func.func @transform_1(%arg0: i32, %arg1: i32) -> (i32, i32) {
    %c1_i32 = arith.constant 1 : i32
    %0 = arith.muli %arg0, %c1_i32 : i32
    %1 = arith.addi %0, %arg1 : i32
    %c0_i32 = arith.constant 0 : i32
    %2 = arith.minsi %1, %c0_i32 : i32
    %c0_i32_0 = arith.constant 0 : i32
    %c0_i32_1 = arith.constant 0 : i32
    return %c0_i32_0, %2 : i32, i32
  }
  func.func @transform_2(%arg0: i32, %arg1: i32) -> (i32, i32, i32) {
    %c0_i32 = arith.constant 0 : i32
    %c0_i32_0 = arith.constant 0 : i32
    %c0_i32_1 = arith.constant 0 : i32
    return %arg0, %c0_i32, %c0_i32_0 : i32, i32, i32
  }
}

</mosaic_0001>

<bundles_post_ra>
// kernel: tpu_custom_call.1
= control target key start
LH: loop header
LB: loop body
LE: loop exit
PB: predicated region body
PF: predicated region fallthrough
CT: control target
= control target key end

     0   :  { %7 = vsyncpa [#allocation4], 0  ;;  %s686_s0 = inlined_call_operand.vmem [shape: f32[24,1], index: 0, kind: input, shape index: {}]   ;;  %s687_s1 = inlined_call_operand.vmem [shape: s32[8,1], index: 1, kind: input, shape index: {}]   ;;  %s688_s2 = inlined_call_operand.hbm [shape: f32[2,8,128], index: 2, kind: output, shape index: {}]  }
   0x1   :  { %9 = vsyncpa [#allocation4 + $0x1], 0  ;;  %s564_s9 = smov 0   ;;  %s566_s10 = smov 0  }
   0x2   :  { %s568_s11 = smov 0   ;;  %s570_s12 = smov 0  }
   0x3   :  { %s572_s13 = smov 0   ;;  %s574_s14 = smov 0  }
   0x4 LB: > { %s381_s15 = sadd.s32 4294967295, %s545_s14   ;;  %s382_s16 = sadd.s32 4294967294, %s545_s14   ;;  %s545_s14 = sphi %s574_s14, %s15_s14   ;;  %s541_s13 = sphi %s572_s13, %s695_s13   ;;  %s537_s12 = sphi %s570_s12, %s694_s12   ;;  %s533_s11 = sphi %s568_s11, %s693_s11   ;;  %s529_s10 = sphi %s566_s10, %s692_s10   ;;  %s525_s9 = sphi %s564_s9, %s691_s9  }
   0x5   : > { %s27_s17 = sadd.s32 1, %s541_s13  ;;  %s98_s18 = sadd.s32 1, %s533_s11 }
   0x6   : > { %p29_p0 = scmp.ge.s32.totalorder %s27_s17, 2  ;;  %p108_p1 = scmp.ne.s32.totalorder %s533_s11, %s529_s10 }
   0x7   : > { %p109_p2 = scmp.eq.s32.totalorder %s381_s15, 1  ;;  %p114_p3 = scmp.ne.s32.totalorder %s529_s10, %s525_s9 }
   0x8   : > { %s697_s17 = smov (%p29_p0, %s27_s17), 0  ;;  %p115_p5 = scmp.eq.s32.totalorder %s382_s16, 1 }
   0x9   : > { %p604_p4 = por %p109_p2, %p108_p1  ;;  %s95_s20 = ssub.s32 %s541_s13, %s697_s17 }
   0xa   : > { %p385_p6 = scmp.ge.s32.totalorder %s545_s14, 1  ;;  %p96_p7 = scmp.eq.s32.totalorder %s95_s20, 0 }
   0xb   : > { %p611_p8 = por %p115_p5, %p114_p3  ;;  %p159_p9 = scmp.lt.s32.totalorder %s545_s14, 3 }
   0xc   : > { %s617_s22 = scalar_select %p96_p7, %s533_s11, %s98_s18  }
   0xd   : > { %p160_p10 = pnand %p385_p6, %p159_p9 }
   0xe   : > { %p191_p11 = scmp.lt.s32.totalorder (!%p160_p10), %s537_s12, 0  ;;  %vm214_vm0 = vcmask (!%p160_p10), 7168   ;;  %v547_v0 = vmov (!%p160_p10), 0.0   ;;  %v257_v18 = vlaneseq (!%p160_p10)  ;;  %v261_v22 = vstv (!%p160_p10), %s537_s12  ;;  %s187_s3 = sand.u32 (!%p160_p10), 1, %s529_s10  }
   0xf   : > { %163 = sbr.rel (%p160_p10) target bundleno = 307 (0x133), region = 28  ;;  %215 = vst.msk [vmem:[#allocation2] sm:$0xff] (!%p160_p10), %vm214_vm0, %v547_v0  ;;  %s386_s4 = sshll.u32 (!%p160_p10), %s187_s3, 3 }
  0x10   : > { %v258_v21 = vand.u32 (!%p160_p10), 127, %v257_v18  ;;  %v260_v27 = vshrl.u32 (!%p160_p10), %v257_v18, 7  ;;  %s189_s5 = scalar_lea.vmem (!%p160_p10), [#allocation3], %s386_s4  ;;  %s396_s7 = sshll.u32 (!%p160_p10), %s537_s12, 7 }
  0x11   : > { %s302_s6 = sshll.u32 (!%p160_p10), %s189_s5, 4  ;;  %s641_s18 = scalar_lea.hbm (!%p160_p10), %s688_s2, %s396_s7  ;;  %s636_s6 = int_to_ptr.vmem [resolvable:$true] %s302_s6 }
  0x12   : > { %v262_v28 = vadd.s32 (!%p160_p10), %v261_v22, %v258_v21  ;;  %s289_s20 = scalar_lea.sflag (!%p160_p10), [#allocation4], %s187_s3 }
  0x14   : > { %v263_v35 = vadd.s32 (!%p160_p10), %v262_v28, %v260_v27  ;;  %vm264_vm4 = vcmp.lt.s32.totalorder (!%p160_p10), %v262_v28, 1 }
  0x16   : > { %s192_s23 = scalar_select %p191_p11, %s537_s12, 0  ;;  %vm265_vm5 = vcmp.lt.s32.totalorder %v263_v35, 8  ;;  %v267_v43 = vld [vmem:[#allocation2] sm:$0xff] }
  0x17   : > { %vm266_vm6 = vmand %vm264_vm4, %vm265_vm5  ;;  %s548_s12 = smov [#allocation3]  }
  0x18   : > { %s699_s23 = smov (!%p191_p11, %s192_s23), 0 }
  0x19   : > { %s390_s24 = sshll.u32 %s699_s23, 3  ;;  %s467_s23 = scalar_lea.vmem %s636_s6, 128 }
  0x1a   : > { %s196_s27 = scalar_lea.vmem %s686_s0, %s390_s24  ;;  %s206_s30 = scalar_lea.vmem %s687_s1, %s390_s24 }
  0x1b   : > { %v217_v1 = vld [vmem:[%s196_s27] sm:$0xff]  ;;  %v218_v2 = vld [vmem:[%s196_s27 + $0x8] sm:$0xff]  ;;  %v219_v3 = vld [vmem:[%s196_s27 + $0x10] sm:$0xff]  ;;  %p468_p12 = scmp.ne.s32.totalorder %s636_s6, %s467_s23  ;;  %s471_s24 = sshll.u32 %s548_s12, 4  ;;  %s472_s24 = int_to_ptr.vmem [resolvable:$false] %s471_s24 }
  0x1c   : > { %v220_v4 = vmax.f32 %v217_v1, %v218_v2  ;;  %v216_v16 = vld [vmem:[%s206_s30] sm:$0xff]  ;;  %s473_s25 = scalar_lea.vmem %s472_s24, 256  ;;  %p474_p1 = scmp.lt.s32.totalorder %s636_s6, %s472_s24 }
  0x1d   : > { %vm226_vm1 = vcmp.eq.s32.totalorder %v216_v16, 0  ;;  %vm234_vm2 = vcmp.eq.s32.totalorder %v216_v16, 1  ;;  %vm242_vm3 = vcmp.eq.s32.totalorder %v216_v16, 2  ;;  %p469_p13 = pnand %p468_p12, %p604_p4  ;;  %p475_p2 = scmp.lt.s32.totalorder %s473_s25, %s467_s23 }
  0x1e   : > { %v221_v5 = vmax.f32 %v220_v4, %v219_v3  ;;  %v229_v24 = vsel %vm226_vm1, 0.7, %v547_v0 }
  0x1f   : > { %v237_v31 = vsel %vm234_vm2, 0.3, %v229_v24  ;;  %p470_p0 = pneg %p469_p13  ;;  %p476_p3 = por %p475_p2, %p474_p1 }
  0x20   : > { %v222_v6 = vsub.f32 %v217_v1, %v221_v5  ;;  %v230_v7 = vsub.f32 %v218_v2, %v221_v5  ;;  %v238_v8 = vsub.f32 %v219_v3, %v221_v5  ;;  %v245_v37 = vsel %vm242_vm3, 0.3, %v237_v31 }
  0x21   : > { %p477_p5 = pnand %p476_p3, %p470_p0 }
  0x22   : > { %v223_v9 = vmul.f32 1.442695, %v222_v6  ;;  %v231_v10 = vmul.f32 1.442695, %v230_v7  ;;  %v239_v11 = vmul.f32 1.442695, %v238_v8 }
  0x23   : > { %v228_v23 = vsel %vm226_vm1, %v222_v6, 0.0 }
  0x24   : > { %457 = vpow2.f32 %v223_v9  ;;  %v236_v30 = vsel %vm234_vm2, %v230_v7, %v228_v23 }
  0x25   : > { %459 = vpow2.f32 %v231_v10  ;;  %v244_v36 = vsel %vm242_vm3, %v238_v8, %v236_v30 }
  0x26   : > { %461 = vpow2.f32 %v239_v11 }
  0x2e   : > { %v458_v12 = vpop.eup %457 }
  0x2f   : > { %v460_v13 = vpop.eup %459  ;;  %v227_v19 = vsel %vm226_vm1, %v458_v12, 0.0 }
  0x30   : > { %v462_v14 = vpop.eup %461  ;;  %v233_v15 = vadd.f32 %v460_v13, %v458_v12  ;;  %v235_v20 = vsel %vm234_vm2, %v460_v13, %v227_v19 }
  0x31   : > { %v243_v25 = vsel %vm242_vm3, %v462_v14, %v235_v20 }
  0x32   : > { %v241_v17 = vadd.f32 %v462_v14, %v233_v15 }
  0x34   : > { %463 = vlog2.f32 %v241_v17 }
  0x35   : > { %465 = vrcp.f32 %v241_v17 }
  0x3e   : > { %v464_v26 = vpop.eup %463 }
  0x3f   : > { %v466_v29 = vpop.eup %465  ;;  %v247_v33 = vmul.f32 0.6931472, %v464_v26 }
  0x40   : > { %v250_v32 = vmul.f32 %v466_v29, %v243_v25 }
  0x41   : > { %v248_v39 = vsub.f32 %v244_v36, %v247_v33 }
  0x42   : > { %v251_v34 = vsub.f32 1.0, %v250_v32 }
  0x44   : > { %v252_v38 = vmul.f32 %v251_v34, %v251_v34 }
  0x46   : > { %v253_v40 = vmul.f32 %v252_v38, %v245_v37 }
  0x48   : > { %v254_v41 = vsub.f32 0.0, %v253_v40 }
  0x4a   : > { %v255_v42 = vmul.f32 %v254_v41, %v248_v39 }
  0x4c   : > { %v268_v44 = vsel %vm266_vm6, %v255_v42, 0.0 }
  0x4d   : > { %v269_v45 = vadd.f32 %v268_v44, %v267_v43 }
  0x4f   : > { %271 = vst.msk [vmem:[#allocation2] sm:$0xff] %vm214_vm0, %v269_v45 }
  0x56   : > { %v275_v46 = vld [vmem:[#allocation2] sm:$0xff] }
  0x57   : > { %v276_v47 = vsel %vm214_vm0, %v275_v46, 0.0 }
  0x58   : > { %277 = vadd.xlane.f32.xlu0 %v276_v47 }
  0xe5   : > { %v278_v48 = vpop.xlane.xlu0 %277 }
  0xe6   : > { %v279_v49 = vrot.slane %v278_v48, 4 }
  0xe8   : > { %v280_v50 = vadd.f32 %v279_v49, %v278_v48 }
  0xea   : > { %v281_v51 = vrot.slane %v280_v50, 2 }
  0xec   : > { %v282_v52 = vadd.f32 %v281_v51, %v280_v50 }
  0xee   : > { %v283_v53 = vrot.slane %v282_v52, 1 }
  0xf0   : > { %v284_v54 = vadd.f32 %v283_v53, %v282_v52 }
  0xf2   : > { %399 = vpush %v284_v54 }
 0x123   : > { %s400_s8 = spop %399 }
 0x124   : > { %v286_v55 = vstv %s400_s8 }
 0x125   : > { %287 = vst [vmem:[%s189_s5] sm:$0xff] %v286_v55 }
 0x126   : > { %480 = shalt.err (!%p477_p5)
}
 0x127   : > { %s481_s26 = scalar_lea.hbm %s641_s18, 128  ;;  %s485_s29 = scalar_lea.hbm %s688_s2, 256 }
 0x128   : > { %p482_p6 = scmp.ne.s32.totalorder %s641_s18, %s481_s26  ;;  %p486_p10 = scmp.lt.u32.totalorder %s641_s18, %s688_s2 }
 0x129   : > { %p487_p11 = scmp.lt.u32.totalorder %s485_s29, %s481_s26  ;;  %p489_p13 = scmp.lt.u32.totalorder %s481_s26, %s641_s18 }
 0x12a   : > { %p483_p7 = pnand %p482_p6, %p604_p4 }
 0x12b   : > { %p488_p12 = por %p487_p11, %p486_p10 }
 0x12c   : > { %p484_p9 = pneg %p483_p7 }
 0x12d   : > { %p490_p0 = por %p489_p13, %p488_p12 }
 0x12f   : > { %p491_p1 = pnand %p490_p0, %p484_p9 }
 0x131   : > { %494 = shalt.err (!%p491_p1)
}
 0x132   : > { %401 = dma.vmem_to_hbm [thread:$0]  (%p604_p4), %s636_s6, 128, %s641_s18, %s289_s20  }
 0x133 PF: > { %p407_p2 = scmp.ge.s32.totalorder %s545_s14, 2  ;;  %s314_s4 = sand.u32 1, %s525_s9  }
 0x134   : > { %s315_s5 = scalar_lea.sflag [#allocation4], %s314_s4 }
 0x135   : > { %p404_p3 = pnand %p407_p2, %p611_p8 }
 0x137   : > { %520 = dma.done.wait (!%p404_p3), %s315_s5, 128  }
 0x138   : > { %522 = vsyncadd (!%p404_p3), %s315_s5, 4294967168  ;;  %s15_s14 = sadd.s32 1, %s545_s14   ;;  %s691_s9 = smov %s529_s10 }
 0x139   : > { %p12_p5 = scmp.ge.s32.totalorder %s15_s14, 4   ;;  %s692_s10 = smov %s533_s11 }
 0x13a   : > { %s693_s11 = smov %s617_s22  ;;  %s694_s12 = smov %s541_s13 }
 0x13b   : > { %s695_s13 = smov %s697_s17  ;;  %14 = sbr.rel (!%p12_p5) target bundleno = 4 (0x4), region = 74 }
 0x142   :  { %320 = vsyncpa [#allocation4], 1 }
 0x143   :  { %322 = vsyncpa [#allocation4 + $0x1], 1 }

</bundles_post_ra>
